<compile_context>
chip_gen: v6e
topology: v6e:2x2x1
jax: 0.10.0
libtpu: 0.0.40
codegen_flags: <defaults>
</compile_context>

<pallas_src>
import jax
import jax.numpy as jnp
from jax.experimental import pallas as pl
from jax.experimental.pallas import tpu as pltpu

HIDDEN_PAD = 128   # hidden width 64 zero-padded to a full 128-lane vreg width


def _cdiv(a, b):
    return -(-a // b)


def _round_up(a, b):
    return _cdiv(a, b) * b


def make_policy_kernel(num_outputs):
    def policy_kernel(x_ref, w1_ref, w2_ref, w3_ref, b_ref, mean_ref):
        x = x_ref[...]                                              # (TB, num_inputs)

        b1 = b_ref[0:1, :]                                          # (1, 128)
        b2 = b_ref[1:2, :]                                          # (1, 128)
        b3 = b_ref[2:3, :][:, :num_outputs]                         # (1, num_outputs)

        # affine1 + tanh  (padded hidden units stay exactly tanh(0) = 0)
        h1 = jnp.tanh(jnp.dot(x, w1_ref[...],
                              preferred_element_type=jnp.float32) + b1)
        # affine2 + tanh
        h2 = jnp.tanh(jnp.dot(h1, w2_ref[...],
                              preferred_element_type=jnp.float32) + b2)
        # action_mean, written at its true lane width (num_outputs)
        mean = jnp.dot(h2, w3_ref[...],
                       preferred_element_type=jnp.float32) + b3
        mean_ref[...] = mean.astype(mean_ref.dtype)                 # (TB, num_outputs)

    return policy_kernel


def _choose_grid(B):
    """Pick (n_tiles, tile_b).
    - cap 4096 rows/tile (2048 on v5e: 16 MiB scoped-VMEM default),
    - on v7x force >= 2 (even) grid steps when B >= 256 so both TCs are used,
    - tile_b = round_up(cdiv(B, n_tiles), 8) to minimize batch padding."""
    try:
        kind = jax.devices()[0].device_kind.lower()
    except Exception:
        kind = ""
    is_v5 = "v5" in kind
    is_v7 = "v7" in kind or "7x" in kind

    cap = 2048 if is_v5 else 4096
    n_tiles = max(1, _cdiv(B, cap))
    if is_v7 and B >= 256:
        n_tiles = max(n_tiles, 2)
        if n_tiles % 2:
            n_tiles += 1
    tile_b = _round_up(_cdiv(B, n_tiles), 8)
    return n_tiles, tile_b


def policy_forward(x, params, *, tile_b=None):
    """Policy forward pass. Returns (action_mean, action_log_std, action_std)."""
    w1p, w2p, w3p, b_all, log_std = params
    B, num_inputs = x.shape
    num_outputs = log_std.shape[1]

    if tile_b is None:
        n_tiles, tile_b = _choose_grid(B)
    else:
        tile_b = _round_up(max(8, tile_b), 8)
        n_tiles = _cdiv(B, tile_b)

    Bp = n_tiles * tile_b
    xp = jnp.pad(x, ((0, Bp - B), (0, 0))) if Bp != B else x

    batch_map = lambda i: (i, 0)
    full_map = lambda i: (0, 0)

    mean_pad = pl.pallas_call(
        make_policy_kernel(num_outputs),
        out_shape=jax.ShapeDtypeStruct((Bp, num_outputs), jnp.float32),
        grid_spec=pltpu.PrefetchScalarGridSpec(
            num_scalar_prefetch=0,
            grid=(n_tiles,),
            in_specs=[
                pl.BlockSpec((tile_b, num_inputs), batch_map),        # x
                pl.BlockSpec((num_inputs, HIDDEN_PAD), full_map),     # W1^T (padded)
                pl.BlockSpec((HIDDEN_PAD, HIDDEN_PAD), full_map),     # W2^T (padded)
                pl.BlockSpec((HIDDEN_PAD, num_outputs), full_map),    # W3^T (padded rows)
                pl.BlockSpec((3, HIDDEN_PAD), full_map),              # [b1; b2; b3]
            ],
            out_specs=pl.BlockSpec((tile_b, num_outputs), batch_map),
        ),
        compiler_params=pltpu.CompilerParams(
            dimension_semantics=("parallel",)),
    )(xp, w1p, w2p, w3p, b_all)

    action_mean = mean_pad if Bp == B else mean_pad[:B]
    # Batch-constant outputs: one exp on (1, num_outputs), broadcast outside kernel.
    action_log_std = jnp.broadcast_to(log_std, (B, num_outputs))
    action_std = jnp.broadcast_to(jnp.exp(log_std), (B, num_outputs))
    return action_mean, action_log_std, action_std


def init_policy_params(key, num_inputs, num_outputs, hidden=64):
    """Raw params in PyTorch nn.Linear layout (weight: (out, in), bias: (out,)),
    mirroring default init U(-1/sqrt(fan_in), 1/sqrt(fan_in)) plus the module's
    custom scaling of action_mean weights/bias."""
    k1, k2, k3, k4, k5, k6 = jax.random.split(key, 6)

    def linear_init(kw, kb, fan_in, fan_out):
        bound = 1.0 / jnp.sqrt(jnp.float32(fan_in))
        w = jax.random.uniform(kw, (fan_out, fan_in), jnp.float32, -bound, bound)
        b = jax.random.uniform(kb, (fan_out,), jnp.float32, -bound, bound)
        return w, b

    w1, b1 = linear_init(k1, k2, num_inputs, hidden)
    w2, b2 = linear_init(k3, k4, hidden, hidden)
    w3, b3 = linear_init(k5, k6, hidden, num_outputs)
    w3 = w3 * 0.1          # self.action_mean.weight.data.mul_(0.1)
    b3 = b3 * 0.0          # self.action_mean.bias.data.mul_(0.0)
    log_std = jnp.zeros((1, num_outputs), jnp.float32)
    return dict(w1=w1, b1=b1, w2=w2, b2=b2, w3=w3, b3=b3, log_std=log_std)


def prep_kernel_params(raw):
    """Glue: transpose weights to (in, out), zero-pad the hidden dim 64 -> 128,
    keep the output lane width at num_outputs, and pack all biases into one
    (3, 128) array. Numerically identical to the raw params."""
    hidden = raw["w1"].shape[0]
    num_inputs = raw["w1"].shape[1]
    num_outputs = raw["w3"].shape[0]

    w1p = jnp.pad(raw["w1"].T, ((0, 0), (0, HIDDEN_PAD - hidden)))           # (in, 128)
    w2p = jnp.pad(raw["w2"].T, ((0, HIDDEN_PAD - hidden),
                                (0, HIDDEN_PAD - hidden)))                   # (128, 128)
    w3p = jnp.pad(raw["w3"].T, ((0, HIDDEN_PAD - hidden), (0, 0)))           # (128, out)

    b_all = jnp.zeros((3, HIDDEN_PAD), jnp.float32)
    b_all = b_all.at[0, :hidden].set(raw["b1"])
    b_all = b_all.at[1, :hidden].set(raw["b2"])
    b_all = b_all.at[2, :num_outputs].set(raw["b3"])
    return (w1p, w2p, w3p, b_all, raw["log_std"])


def policy_reference(x, raw):
    """Pure-JAX reference (unpadded PyTorch-layout params) for correctness check."""
    h1 = jnp.tanh(x @ raw["w1"].T + raw["b1"])
    h2 = jnp.tanh(h1 @ raw["w2"].T + raw["b2"])
    mean = h2 @ raw["w3"].T + raw["b3"]
    log_std_b = jnp.broadcast_to(raw["log_std"], mean.shape)
    return mean, log_std_b, jnp.exp(log_std_b)


if __name__ == "__main__":
    num_inputs = 32
    num_outputs = 8
    batch = 8

    key = jax.random.PRNGKey(0)
    kx, kp = jax.random.split(key)
    x = jax.random.normal(kx, (batch, num_inputs), jnp.float32)
    raw = init_policy_params(kp, num_inputs, num_outputs)
    params = prep_kernel_params(raw)

    mean, log_std, std = policy_forward(x, params)
    jax.block_until_ready((mean, log_std, std))

    ref_mean, ref_log_std, ref_std = policy_reference(x, raw)
    assert jnp.allclose(mean, ref_mean, atol=1e-5, rtol=1e-5)
    assert jnp.allclose(log_std, ref_log_std, atol=1e-6)
    assert jnp.allclose(std, ref_std, atol=1e-6)

    print("KERNEL_OK")
</pallas_src>

<mosaic_0001>
module attributes {stable_mosaic.version = 11 : i64} {
  func.func @policy_kernel(%arg0: i32, %arg1: memref<8x32xf32, #tpu.memory_space<vmem>>, %arg2: memref<32x128xf32, #tpu.memory_space<vmem>>, %arg3: memref<128x128xf32, #tpu.memory_space<vmem>>, %arg4: memref<128x8xf32, #tpu.memory_space<vmem>>, %arg5: memref<3x128xf32, #tpu.memory_space<vmem>>, %arg6: memref<8x8xf32, #tpu.memory_space<vmem>>) attributes {dimension_semantics = [#tpu.dimension_semantics<parallel>], iteration_bounds = array<i64: 1>, scalar_prefetch = 0 : i64, scratch_operands = 0 : i64, tpu.core_type = #tpu.core_type<tc>, window_params = [{transform_indices = @transform_0, window_bounds = array<i64: 8, 32>}, {pipeline_mode = #tpu.pipeline_mode<synchronous>, transform_indices = @transform_1, window_bounds = array<i64: 32, 128>}, {pipeline_mode = #tpu.pipeline_mode<synchronous>, transform_indices = @transform_2, window_bounds = array<i64: 128, 128>}, {pipeline_mode = #tpu.pipeline_mode<synchronous>, transform_indices = @transform_3, window_bounds = array<i64: 128, 8>}, {pipeline_mode = #tpu.pipeline_mode<synchronous>, transform_indices = @transform_4, window_bounds = array<i64: 3, 128>}, {transform_indices = @transform_5, window_bounds = array<i64: 8, 8>}]} {
    %c0 = arith.constant 0 : index
    %c0_0 = arith.constant 0 : index
    %0 = vector.load %arg1[%c0, %c0_0] : memref<8x32xf32, #tpu.memory_space<vmem>>, vector<8x32xf32>
    %c0_1 = arith.constant 0 : index
    %c0_2 = arith.constant 0 : index
    %1 = vector.load %arg5[%c0_1, %c0_2] : memref<3x128xf32, #tpu.memory_space<vmem>>, vector<1x128xf32>
    %c1 = arith.constant 1 : index
    %c0_3 = arith.constant 0 : index
    %2 = vector.load %arg5[%c1, %c0_3] : memref<3x128xf32, #tpu.memory_space<vmem>>, vector<1x128xf32>
    %c2 = arith.constant 2 : index
    %c0_4 = arith.constant 0 : index
    %3 = vector.load %arg5[%c2, %c0_4] : memref<3x128xf32, #tpu.memory_space<vmem>>, vector<1x128xf32>
    %4 = vector.extract_strided_slice %3 {offsets = [0, 0], sizes = [1, 8], strides = [1, 1]} : vector<1x128xf32> to vector<1x8xf32>
    %c0_5 = arith.constant 0 : index
    %c0_6 = arith.constant 0 : index
    %5 = vector.load %arg2[%c0_5, %c0_6] : memref<32x128xf32, #tpu.memory_space<vmem>>, vector<32x128xf32>
    %cst = arith.constant dense<0.000000e+00> : vector<8x128xf32>
    %6 = tpu.matmul %0, %5, %cst {dimension_numbers = #tpu.dot_dimension_numbers<[1], [0], [0], [1], [0, 0, 1, 1], [], []>} : vector<8x32xf32>, vector<32x128xf32>, vector<8x128xf32> -> vector<8x128xf32>
    %7 = vector.broadcast %1 : vector<1x128xf32> to vector<8x128xf32>
    %8 = arith.addf %6, %7 : vector<8x128xf32>
    %9 = math.tanh %8 : vector<8x128xf32>
    %c0_7 = arith.constant 0 : index
    %c0_8 = arith.constant 0 : index
    %10 = vector.load %arg3[%c0_7, %c0_8] : memref<128x128xf32, #tpu.memory_space<vmem>>, vector<128x128xf32>
    %cst_9 = arith.constant dense<0.000000e+00> : vector<8x128xf32>
    %11 = tpu.matmul %9, %10, %cst_9 {dimension_numbers = #tpu.dot_dimension_numbers<[1], [0], [0], [1], [0, 0, 1, 1], [], []>} : vector<8x128xf32>, vector<128x128xf32>, vector<8x128xf32> -> vector<8x128xf32>
    %12 = vector.broadcast %2 : vector<1x128xf32> to vector<8x128xf32>
    %13 = arith.addf %11, %12 : vector<8x128xf32>
    %14 = math.tanh %13 : vector<8x128xf32>
    %c0_10 = arith.constant 0 : index
    %c0_11 = arith.constant 0 : index
    %15 = vector.load %arg4[%c0_10, %c0_11] : memref<128x8xf32, #tpu.memory_space<vmem>>, vector<128x8xf32>
    %cst_12 = arith.constant dense<0.000000e+00> : vector<8x8xf32>
    %16 = tpu.matmul %14, %15, %cst_12 {dimension_numbers = #tpu.dot_dimension_numbers<[1], [0], [0], [1], [0, 0, 1, 1], [], []>} : vector<8x128xf32>, vector<128x8xf32>, vector<8x8xf32> -> vector<8x8xf32>
    %17 = vector.broadcast %4 : vector<1x8xf32> to vector<8x8xf32>
    %18 = arith.addf %16, %17 : vector<8x8xf32>
    %c0_13 = arith.constant 0 : index
    %c0_14 = arith.constant 0 : index
    %19 = vector.load %arg6[%c0_13, %c0_14] : memref<8x8xf32, #tpu.memory_space<vmem>>, vector<8x8xf32>
    tpu.vector_store %arg6[%c0_13, %c0_14], %18 {strides = array<i32>} : memref<8x8xf32, #tpu.memory_space<vmem>>, vector<8x8xf32>,
    return
  }
  func.func @transform_0(%arg0: i32) -> (i32, i32) {
    %c0_i32 = arith.constant 0 : i32
    %c0_i32_0 = arith.constant 0 : i32
    return %arg0, %c0_i32 : i32, i32
  }
  func.func @transform_1(%arg0: i32) -> (i32, i32) {
    %c0_i32 = arith.constant 0 : i32
    %c0_i32_0 = arith.constant 0 : i32
    %c0_i32_1 = arith.constant 0 : i32
    return %c0_i32, %c0_i32_0 : i32, i32
  }
  func.func @transform_2(%arg0: i32) -> (i32, i32) {
    %c0_i32 = arith.constant 0 : i32
    %c0_i32_0 = arith.constant 0 : i32
    %c0_i32_1 = arith.constant 0 : i32
    return %c0_i32, %c0_i32_0 : i32, i32
  }
  func.func @transform_3(%arg0: i32) -> (i32, i32) {
    %c0_i32 = arith.constant 0 : i32
    %c0_i32_0 = arith.constant 0 : i32
    %c0_i32_1 = arith.constant 0 : i32
    return %c0_i32, %c0_i32_0 : i32, i32
  }
  func.func @transform_4(%arg0: i32) -> (i32, i32) {
    %c0_i32 = arith.constant 0 : i32
    %c0_i32_0 = arith.constant 0 : i32
    %c0_i32_1 = arith.constant 0 : i32
    return %c0_i32, %c0_i32_0 : i32, i32
  }
  func.func @transform_5(%arg0: i32) -> (i32, i32) {
    %c0_i32 = arith.constant 0 : i32
    %c0_i32_0 = arith.constant 0 : i32
    return %arg0, %c0_i32 : i32, i32
  }
}

</mosaic_0001>

<bundles_post_ra>
// kernel: tpu_custom_call.1
= control target key start
LH: loop header
LB: loop body
LE: loop exit
PB: predicated region body
PF: predicated region fallthrough
CT: control target
= control target key end

     0   :  { %10 = vsyncpa [#allocation3], 0  ;;  %s690_s0 = inlined_call_operand.vmem [shape: f32[8,32], index: 0, kind: input, shape index: {}]   ;;  %s691_s1 = inlined_call_operand.hbm [shape: f32[32,128], index: 1, kind: input, shape index: {}]   ;;  %s692_s2 = inlined_call_operand.vmem [shape: f32[128,128], index: 2, kind: input, shape index: {}]   ;;  %s693_s3 = inlined_call_operand.vmem [shape: f32[128,8], index: 3, kind: input, shape index: {}]   ;;  %s694_s4 = inlined_call_operand.vmem [shape: f32[3,128], index: 4, kind: input, shape index: {}]   ;;  %s695_s5 = inlined_call_operand.hbm [shape: f32[8,8], index: 5, kind: output, shape index: {}]  }
   0x1   :  { %11 = vsyncpa [#allocation4], 0  ;;  %s498_s18 = smov [#allocation2]  }
   0x2   :  { %s19_s19 = sshll.u32 %s498_s18, 4  ;;  %s20_s19 = int_to_ptr.vmem [resolvable:$true] %s19_s19 }
   0x3   :  { %s462_s20 = scalar_lea.vmem %s20_s19, 512  ;;  %p467_p1 = scmp.lt.s32.totalorder %s20_s19, %s20_s19 }
   0x4   :  { %p463_p0 = scmp.ne.s32.totalorder %s20_s19, %s462_s20  ;;  %p468_p2 = scmp.lt.s32.totalorder %s462_s20, %s462_s20 }
   0x6   :  { %p469_p3 = por %p468_p2, %p467_p1 }
   0x8   :  { %p470_p4 = pnand %p469_p3, %p463_p0 }
   0xa   :  { %473 = shalt.err (!%p470_p4)
}
   0xb   :  { %s499_s21 = smov 128   ;;  %s500_s22 = smov 8  }
   0xc   :  { %25 = dma.hbm_to_vmem [thread:$0]  %s691_s1, 512, %s20_s19, [#allocation3], %s499_s21, %s499_s21, %s500_s22  }
   0xd   :  { %494 = dma.done.wait [#allocation3], 512  }
   0xe   :  { %495 = vsyncadd [#allocation3], 4294966784  ;;  %v501_v0 = vmov 0.0   ;;  %vm502_vm0 = vmmov 0   ;;  %v42_v1 = vld [vmem:[#allocation2 + $0x18] sm:$0xff]  ;;  %v41_v2 = vld [vmem:[#allocation2 + $0x10] sm:$0xff] }
   0xf   :  { %363 = vmatprep.subr.mxu0 %v501_v0  ;;  %371 = vmatprep.mubr.msk.f32.mxu0 %vm502_vm0, %v501_v0  ;;  %v137_v3 = vld [vmem:[%s692_s2 + $0x78] sm:$0xff]  ;;  %v40_v4 = vld [vmem:[#allocation2 + $0x8] sm:$0xff]  ;;  %v136_v5 = vld [vmem:[%s692_s2 + $0x70] sm:$0xff]  ;;  %vm47_vm1 = vcmask 261120   ;;  %s503_s14 = smov [#allocation5]   ;;  %vm303_vm2 = vcmask 64512  }
  0x10   :  { %374 = vmatprep.subr.mxu1 %v501_v0  ;;  %406 = vmatprep.mubr.msk.f32.mxu1 %vm502_vm0, %v501_v0  ;;  %v135_v6 = vld [vmem:[%s692_s2 + $0x68] sm:$0xff]  ;;  %v39_v7 = vld [vmem:[#allocation2] sm:$0xff]  ;;  %v133_v10 = vld [vmem:[%s692_s2 + $0x58] sm:$0xff] }
  0x11   :  { %364 = vmatpush3.msra.mxu0 %v42_v1  ;;  %375 = vmatpush3.msra.mxu1 %v137_v3  ;;  %v35_v8 = vld [vmem:[%s690_s0] sm:$0xff]  ;;  %v132_v11 = vld [vmem:[%s692_s2 + $0x50] sm:$0xff]  ;;  %v131_v12 = vld [vmem:[%s692_s2 + $0x48] sm:$0xff] }
  0x12   :  { %365 = vmatprep.subr.mxu0 %v501_v0  ;;  %376 = vmatprep.subr.mxu1 %v501_v0  ;;  %v134_v9 = vld [vmem:[%s692_s2 + $0x60] sm:$0xff]  ;;  %v129_v14 = vld [vmem:[%s692_s2 + $0x38] sm:$0xff]  ;;  %v128_v15 = vld [vmem:[%s692_s2 + $0x30] sm:$0xff] }
  0x13   :  { %366 = vmatpush3.msra.mxu0 %v41_v2  ;;  %377 = vmatpush3.msra.mxu1 %v136_v5  ;;  %v130_v13 = vld [vmem:[%s692_s2 + $0x40] sm:$0xff]  ;;  %v127_v16 = vld [vmem:[%s692_s2 + $0x28] sm:$0xff]  ;;  %v125_v18 = vld [vmem:[%s692_s2 + $0x18] sm:$0xff] }
  0x14   :  { %367 = vmatprep.subr.mxu0 %v501_v0  ;;  %378 = vmatprep.subr.mxu1 %v501_v0  ;;  %v126_v17 = vld [vmem:[%s692_s2 + $0x20] sm:$0xff]  ;;  %v124_v19 = vld [vmem:[%s692_s2 + $0x10] sm:$0xff]  ;;  %v123_v20 = vld [vmem:[%s692_s2 + $0x8] sm:$0xff] }
  0x15   :  { %368 = vmatpush3.msra.mxu0 %v40_v4  ;;  %379 = vmatpush3.msra.mxu1 %v135_v6  ;;  %v122_v21 = vld [vmem:[%s692_s2] sm:$0xff]  ;;  %v228_v22 = vld [vmem:[%s693_s3 + $0x78] sm:$0xff]  ;;  %v227_v23 = vld [vmem:[%s693_s3 + $0x70] sm:$0xff] }
  0x16   :  { %369 = vmatprep.subr.mxu0 %v501_v0  ;;  %380 = vmatprep.subr.mxu1 %v501_v0  ;;  %v226_v24 = vld [vmem:[%s693_s3 + $0x68] sm:$0xff]  ;;  %v225_v25 = vld [vmem:[%s693_s3 + $0x60] sm:$0xff]  ;;  %v224_v26 = vld [vmem:[%s693_s3 + $0x58] sm:$0xff] }
  0x17   :  { %370 = vmatpush3.msra.mxu0 %v39_v7  ;;  %381 = vmatpush3.msra.mxu1 %v134_v9  ;;  %v223_v27 = vld [vmem:[%s693_s3 + $0x50] sm:$0xff]  ;;  %v222_v28 = vld [vmem:[%s693_s3 + $0x48] sm:$0xff]  ;;  %v320_v29 = vld [vmem:[%s694_s4] ss:$0 sm:$0xff] }
  0x18   :  { %372 = vmatmul.mubr.msk.f32.vlgmr.msra.gmra.mxu0 %vm47_vm1, %v35_v8  ;;  %382 = vmatprep.subr.mxu1 %v501_v0  ;;  %v221_v34 = vld [vmem:[%s693_s3 + $0x40] sm:$0xff]  ;;  %v220_v35 = vld [vmem:[%s693_s3 + $0x38] sm:$0xff]  ;;  %v219_v36 = vld [vmem:[%s693_s3 + $0x30] sm:$0xff] }
  0x19   :  { %409 = vmatprep.subr.mxu0 %v501_v0  ;;  %383 = vmatpush3.msra.mxu1 %v133_v10  ;;  %v218_v37 = vld [vmem:[%s693_s3 + $0x28] sm:$0xff]  ;;  %v217_v38 = vld [vmem:[%s693_s3 + $0x20] sm:$0xff]  ;;  %v216_v39 = vld [vmem:[%s693_s3 + $0x18] sm:$0xff] }
  0x1a   :  { %441 = vmatprep.mubr.msk.f32.mxu0 %vm502_vm0, %v501_v0  ;;  %384 = vmatprep.subr.mxu1 %v501_v0  ;;  %v215_v40 = vld [vmem:[%s693_s3 + $0x10] sm:$0xff]  ;;  %v214_v41 = vld [vmem:[%s693_s3 + $0x8] sm:$0xff]  ;;  %v213_v42 = vld [vmem:[%s693_s3] sm:$0xff]  ;;  %s311_s3 = sshll.u32 %s503_s14, 4  ;;  %s312_s3 = int_to_ptr.vmem [resolvable:$true] %s311_s3 }
  0x1b   :  { %385 = vmatpush3.msra.mxu1 %v132_v11  ;;  %410 = vmatpush3.msra.mxu0 %v228_v22  ;;  %v322_v43 = vld [vmem:[%s694_s4 + $0x1] ss:$0 sm:$0xff]  ;;  %v323_v48 = vld [vmem:[%s694_s4 + $0x2] ss:$0 sm:$0xff]  ;;  %s474_s15 = scalar_lea.vmem %s312_s3, 128  ;;  %p479_p6 = scmp.lt.s32.totalorder %s312_s3, %s312_s3 }
  0x1c   :  { %386 = vmatprep.subr.mxu1 %v501_v0  ;;  %411 = vmatprep.subr.mxu0 %v501_v0  ;;  %p475_p5 = scmp.ne.s32.totalorder %s312_s3, %s474_s15  ;;  %p480_p7 = scmp.lt.s32.totalorder %s474_s15, %s474_s15 }
  0x1d   :  { %387 = vmatpush3.msra.mxu1 %v131_v12  ;;  %412 = vmatpush3.msra.mxu0 %v227_v23 }
  0x1e   :  { %388 = vmatprep.subr.mxu1 %v501_v0  ;;  %413 = vmatprep.subr.mxu0 %v501_v0  ;;  %p481_p8 = por %p480_p7, %p479_p6 }
  0x1f   :  { %389 = vmatpush3.msra.mxu1 %v130_v13  ;;  %414 = vmatpush3.msra.mxu0 %v226_v24 }
  0x20   :  { %390 = vmatprep.subr.mxu1 %v501_v0  ;;  %415 = vmatprep.subr.mxu0 %v501_v0  ;;  %p482_p9 = pnand %p481_p8, %p475_p5 }
  0x21   :  { %391 = vmatpush3.msra.mxu1 %v129_v14  ;;  %416 = vmatpush3.msra.mxu0 %v225_v25 }
  0x22   :  { %392 = vmatprep.subr.mxu1 %v501_v0  ;;  %417 = vmatprep.subr.mxu0 %v501_v0 }
  0x23   :  { %393 = vmatpush3.msra.mxu1 %v128_v15  ;;  %418 = vmatpush3.msra.mxu0 %v224_v26 }
  0x24   :  { %394 = vmatprep.subr.mxu1 %v501_v0  ;;  %419 = vmatprep.subr.mxu0 %v501_v0 }
  0x25   :  { %395 = vmatpush3.msra.mxu1 %v127_v16  ;;  %420 = vmatpush3.msra.mxu0 %v223_v27 }
  0x26   :  { %396 = vmatprep.subr.mxu1 %v501_v0  ;;  %421 = vmatprep.subr.mxu0 %v501_v0 }
  0x27   :  { %397 = vmatpush3.msra.mxu1 %v126_v17  ;;  %422 = vmatpush3.msra.mxu0 %v222_v28 }
  0x28   :  { %398 = vmatprep.subr.mxu1 %v501_v0  ;;  %423 = vmatprep.subr.mxu0 %v501_v0 }
  0x29   :  { %399 = vmatpush3.msra.mxu1 %v125_v18  ;;  %424 = vmatpush3.msra.mxu0 %v221_v34 }
  0x2a   :  { %400 = vmatprep.subr.mxu1 %v501_v0  ;;  %425 = vmatprep.subr.mxu0 %v501_v0 }
  0x2b   :  { %401 = vmatpush3.msra.mxu1 %v124_v19  ;;  %426 = vmatpush3.msra.mxu0 %v220_v35 }
  0x2c   :  { %402 = vmatprep.subr.mxu1 %v501_v0  ;;  %427 = vmatprep.subr.mxu0 %v501_v0 }
  0x2d   :  { %403 = vmatpush3.msra.mxu1 %v123_v20  ;;  %428 = vmatpush3.msra.mxu0 %v219_v36 }
  0x2e   :  { %404 = vmatprep.subr.mxu1 %v501_v0  ;;  %429 = vmatprep.subr.mxu0 %v501_v0 }
  0x2f   :  { %405 = vmatpush3.msra.mxu1 %v122_v21  ;;  %430 = vmatpush3.msra.mxu0 %v218_v37 }
  0x30   :  { %431 = vmatprep.subr.mxu0 %v501_v0 }
  0x31   :  { %432 = vmatpush3.msra.mxu0 %v217_v38 }
  0x32   :  { %433 = vmatprep.subr.mxu0 %v501_v0 }
  0x33   :  { %434 = vmatpush3.msra.mxu0 %v216_v39 }
  0x34   :  { %435 = vmatprep.subr.mxu0 %v501_v0 }
  0x35   :  { %436 = vmatpush3.msra.mxu0 %v215_v40 }
  0x36   :  { %437 = vmatprep.subr.mxu0 %v501_v0 }
  0x37   :  { %438 = vmatpush3.msra.mxu0 %v214_v41 }
  0x38   :  { %439 = vmatprep.subr.mxu0 %v501_v0 }
  0x39   :  { %440 = vmatpush3.msra.mxu0 %v213_v42 }
  0xd8   :  { %v117_v30 = vpop.f32.mrf.mxu0 }
  0xd9   :  { %v118_v31 = vadd.f32 %v320_v29, %v117_v30 }
  0xda   :  { %v373_v32 = vpop.f32.mrf.mxu0 }
  0xdb   :  { %450 = vtanh.f32 %v118_v31 }
  0xe8   :  { %v451_v33 = vpop.eup %450 }
  0xe9   :  { %407 = vmatmul.mubr.f32.vlgmr.msra.gmra.mxu1 %v451_v33 }
 0x1a9   :  { %v208_v44 = vpop.f32.mrf.mxu1 }
 0x1aa   :  { %v209_v45 = vadd.f32 %v322_v43, %v208_v44 }
 0x1ab   :  { %v408_v46 = vpop.f32.mrf.mxu1 }
 0x1ac   :  { %452 = vtanh.f32 %v209_v45 }
 0x1b9   :  { %v453_v47 = vpop.eup %452 }
 0x1ba   :  { %442 = vmatmul.mubr.f32.vlgmr.msra.gmra.mxu0 %v453_v47 }
 0x27a   :  { %v299_v49 = vpop.f32.mrf.mxu0 }
 0x27b   :  { %v300_v50 = vadd.f32 %v323_v48, %v299_v49 }
 0x27c   :  { %v443_v51 = vpop.f32.mrf.mxu0 }
 0x27d   :  { %304 = vst.msk [vmem:[#allocation5] sm:$0xff] %vm303_vm2, %v300_v50 }
 0x27e   :  { %485 = shalt.err (!%p482_p9)
}
 0x27f   :  { %314 = dma.vmem_to_hbm [thread:$0]  %s312_s3, 128, %s695_s5, [#allocation4]  }
 0x280   :  { %496 = dma.done.wait [#allocation4], 128  }
 0x281   :  { %497 = vsyncadd [#allocation4], 4294967168 }
 0x282   :  { %318 = vsyncpa [#allocation3], 1 }
 0x283   :  { %319 = vsyncpa [#allocation4], 1 }

</bundles_post_ra>
